<compile_context>
chip_gen: v5e
topology: v5e:2x2
jax: 0.10.0
libtpu: 0.0.40
codegen_flags: <defaults>
</compile_context>

<pallas_src>
import jax
import jax.numpy as jnp
from jax.experimental import pallas as pl
from jax.experimental.pallas import tpu as pltpu

_LANE_PAD = 128     # lane-dense width used for the final matmul inside VMEM
_MAX_TILE_M = 512   # ~85% of HBM roofline per measured Pallas tile scaling


def _round_up(x, m):
    return ((x + m - 1) // m) * m


def _choose_tiling(batch):
    """Pick (tile_m, num_tiles): multiple of 16, <=512 rows, single step for
    small batches, and an even number of balanced tiles for large batches so
    v7x's two TensorCores split the grid evenly."""
    padded = _round_up(batch, 16)
    if padded <= _MAX_TILE_M:
        return padded, 1
    num_tiles = pl.cdiv(padded, _MAX_TILE_M)
    if num_tiles % 2:
        num_tiles += 1
    tile = _round_up(pl.cdiv(padded, num_tiles), 16)
    return tile, num_tiles


def _shadow_attack_kernel(x_ref,
                          w1_ref, b1_ref,      # branch layer 1 (block-diag)
                          w2_ref, b2_ref,      # branch layer 2 (block-diag -> concat)
                          w3_ref, b3_ref,      # encoder Linear(128,256)
                          w4_ref, b4_ref,      # encoder Linear(256,128)
                          w5_ref, b5_ref,      # encoder Linear(128,64)
                          w6_ref, b6_ref,      # encoder Linear(64,2) lane-padded
                          out_ref):
    f32, bf16 = jnp.float32, jnp.bfloat16

    def layer(x, w_ref, b_ref, relu):
        h = (jnp.dot(x.astype(bf16), w_ref[...], preferred_element_type=f32)
             + b_ref[...])
        return jnp.maximum(h, 0.0) if relu else h

    x = x_ref[...]                                # (tile_m, class_num + 1) f32
    h = layer(x, w1_ref, b1_ref, relu=True)       # -> (tile_m, 256)  [out | pred] hidden
    h = layer(h, w2_ref, b2_ref, relu=False)      # -> (tile_m, 128)  == torch.cat(o, p)
    h = layer(h, w3_ref, b3_ref, relu=True)       # -> (tile_m, 256)
    h = layer(h, w4_ref, b4_ref, relu=True)       # -> (tile_m, 128)
    h = layer(h, w5_ref, b5_ref, relu=True)       # -> (tile_m, 64)
    logits = layer(h, w6_ref, b6_ref, relu=False) # -> (tile_m, 128) lane-dense in VMEM

    # Only the 2 real logit columns go back to HBM (8 B/row instead of 512 B).
    out_ref[...] = logits[:, :2].astype(out_ref.dtype)


_WEIGHT_NAMES = ("w1", "b1", "w2", "b2", "w3", "b3",
                 "w4", "b4", "w5", "b5", "w6", "b6")


def shadow_attack_forward(output, prediction, kparams, *, tile_m=None):
    """output: (batch, class_num) f32, prediction: (batch, 1) f32.
    Returns (batch, 2) f32 logits."""
    batch, class_num = output.shape
    assert prediction.shape == (batch, 1)

    if tile_m is None:
        tile_m, num_tiles = _choose_tiling(batch)
    else:
        assert tile_m % 8 == 0, "tile_m must be a multiple of 8 (16+ preferred)"
        num_tiles = pl.cdiv(batch, tile_m)
    padded = tile_m * num_tiles

    # Fold the (batch, 1) prediction column into one input stream (one less DMA
    # per grid step); the block-diagonal w1 routes it to the prediction branch.
    x = jnp.concatenate([output, prediction], axis=1)        # (batch, class_num+1)
    if padded != batch:
        x = jnp.pad(x, ((0, padded - batch), (0, 0)))

    weights = tuple(kparams[n] for n in _WEIGHT_NAMES)

    # Batch tiles stream through the auto double-buffered pipeline; every
    # weight/bias is pinned (constant index_map -> DMA'd once, VMEM-resident).
    in_width = class_num + 1
    in_specs = ([pl.BlockSpec((tile_m, in_width), lambda i: (i, 0))]
                + [pl.BlockSpec(w.shape, lambda i: (0, 0)) for w in weights])
    out_spec = pl.BlockSpec((tile_m, 2), lambda i: (i, 0))

    flops_per_row = 2 * (in_width * 256 + 256 * 128      # merged branch layers
                         + 128 * 256 + 256 * 128         # encoder l1, l2
                         + 128 * 64 + 64 * _LANE_PAD)    # encoder l3, l4 (padded)
    bytes_accessed = (sum(int(a.size) * a.dtype.itemsize for a in weights)
                      + int(x.size) * x.dtype.itemsize
                      + int(padded) * 2 * 4)

    out_padded = pl.pallas_call(
        _shadow_attack_kernel,
        out_shape=jax.ShapeDtypeStruct((padded, 2), jnp.float32),
        grid=(num_tiles,),
        in_specs=in_specs,
        out_specs=out_spec,
        compiler_params=pltpu.CompilerParams(
            dimension_semantics=("parallel",)),
        cost_estimate=pl.CostEstimate(
            flops=int(flops_per_row) * int(padded),
            transcendentals=0,
            bytes_accessed=int(bytes_accessed)),
    )(x, *weights)

    return out_padded[:batch]


def init_params(key, class_num):
    """f32 params, weights in (in, out) layout, PyTorch default U(-1/sqrt(fan_in), ...)."""
    shapes = (("w_o1", (class_num, 128)), ("b_o1", (1, 128)),
              ("w_o2", (128, 64)),        ("b_o2", (1, 64)),
              ("w_p1", (1, 128)),         ("b_p1", (1, 128)),
              ("w_p2", (128, 64)),        ("b_p2", (1, 64)),
              ("w_e1", (128, 256)),       ("b_e1", (1, 256)),
              ("w_e2", (256, 128)),       ("b_e2", (1, 128)),
              ("w_e3", (128, 64)),        ("b_e3", (1, 64)),
              ("w_e4", (64, 2)),          ("b_e4", (1, 2)))
    keys = jax.random.split(key, len(shapes))
    params, fan_in = {}, {}
    for (name, shape), k in zip(shapes, keys):
        if name.startswith("w"):
            fan_in[name[1:]] = shape[0]
        bound = 1.0 / (fan_in[name[1:]] ** 0.5)
        params[name] = jax.random.uniform(k, shape, jnp.float32, -bound, bound)
    return params


def prepare_kernel_params(params):
    """Kernel-facing params: bf16 weights, f32 biases.  The two branches and the
    torch.cat are folded into block-diagonal weights (zero blocks contribute
    exactly 0 in the f32 MXU accumulate, so this is numerically identical to the
    separate-branch formulation); final layer zero-padded to 128 output lanes."""
    bf16 = jnp.bfloat16
    class_num = params["w_o1"].shape[0]

    # Branch layer 1: [output | prediction] input columns -> [out | pred] hiddens.
    w1 = jnp.zeros((class_num + 1, 256), jnp.float32)
    w1 = w1.at[:class_num, :128].set(params["w_o1"])
    w1 = w1.at[class_num:, 128:].set(params["w_p1"])
    b1 = jnp.concatenate([params["b_o1"], params["b_p1"]], axis=1)

    # Branch layer 2: block-diagonal -> output is [o_feat | p_feat] == torch.cat.
    w2 = jnp.zeros((256, 128), jnp.float32)
    w2 = w2.at[:128, :64].set(params["w_o2"])
    w2 = w2.at[128:, 64:].set(params["w_p2"])
    b2 = jnp.concatenate([params["b_o2"], params["b_p2"]], axis=1)

    return {
        "w1": w1.astype(bf16), "b1": b1,
        "w2": w2.astype(bf16), "b2": b2,
        "w3": params["w_e1"].astype(bf16), "b3": params["b_e1"],
        "w4": params["w_e2"].astype(bf16), "b4": params["b_e2"],
        "w5": params["w_e3"].astype(bf16), "b5": params["b_e3"],
        "w6": jnp.pad(params["w_e4"], ((0, 0), (0, _LANE_PAD - 2))).astype(bf16),
        "b6": jnp.pad(params["b_e4"], ((0, 0), (0, _LANE_PAD - 2))),
    }


def reference_forward(output, prediction, params):
    """Pure-JAX mirror of the PyTorch forward (explicit branches + concat), with
    the same bf16 weight/activation quantization at each matmul boundary as the
    kernel.  Not bit-identical to the original f32 torch model (bf16 weights)."""
    bf = lambda a: a.astype(jnp.bfloat16).astype(jnp.float32)
    linear = lambda x, w, b: bf(x) @ bf(w) + b

    h = jnp.maximum(linear(output, params["w_o1"], params["b_o1"]), 0.0)
    o_feat = linear(h, params["w_o2"], params["b_o2"])

    h = jnp.maximum(linear(prediction, params["w_p1"], params["b_p1"]), 0.0)
    p_feat = linear(h, params["w_p2"], params["b_p2"])

    final_inputs = jnp.concatenate([o_feat, p_feat], axis=1)
    h = jnp.maximum(linear(final_inputs, params["w_e1"], params["b_e1"]), 0.0)
    h = jnp.maximum(linear(h, params["w_e2"], params["b_e2"]), 0.0)
    h = jnp.maximum(linear(h, params["w_e3"], params["b_e3"]), 0.0)
    return linear(h, params["w_e4"], params["b_e4"])


if __name__ == "__main__":
    key = jax.random.PRNGKey(0)
    k_out, k_par = jax.random.split(key, 2)

    class_num = 10
    params = init_params(k_par, class_num)
    kparams = prepare_kernel_params(params)

    for batch in (16, 40):   # 40 exercises the pad-to-multiple-of-16 path
        k_b = jax.random.fold_in(k_out, batch)
        output = jax.nn.softmax(
            jax.random.normal(k_b, (batch, class_num), jnp.float32), axis=-1)
        prediction = jnp.max(output, axis=-1, keepdims=True)   # (batch, 1)

        res = shadow_attack_forward(output, prediction, kparams)
        res = jax.block_until_ready(res)

        ref = reference_forward(output, prediction, params)
        assert res.shape == (batch, 2)
        assert jnp.allclose(res, ref, atol=1e-3, rtol=1e-3), "mismatch vs reference"

    print("KERNEL_OK")
</pallas_src>

<mosaic_0001>
module attributes {stable_mosaic.version = 11 : i64} {
  func.func @_shadow_attack_kernel(%arg0: i32, %arg1: memref<16x11xf32, #tpu.memory_space<vmem>>, %arg2: memref<11x256xbf16, #tpu.memory_space<vmem>>, %arg3: memref<1x256xf32, #tpu.memory_space<vmem>>, %arg4: memref<256x128xbf16, #tpu.memory_space<vmem>>, %arg5: memref<1x128xf32, #tpu.memory_space<vmem>>, %arg6: memref<128x256xbf16, #tpu.memory_space<vmem>>, %arg7: memref<1x256xf32, #tpu.memory_space<vmem>>, %arg8: memref<256x128xbf16, #tpu.memory_space<vmem>>, %arg9: memref<1x128xf32, #tpu.memory_space<vmem>>, %arg10: memref<128x64xbf16, #tpu.memory_space<vmem>>, %arg11: memref<1x64xf32, #tpu.memory_space<vmem>>, %arg12: memref<64x128xbf16, #tpu.memory_space<vmem>>, %arg13: memref<1x128xf32, #tpu.memory_space<vmem>>, %arg14: memref<16x2xf32, #tpu.memory_space<vmem>>) attributes {dimension_semantics = [#tpu.dimension_semantics<parallel>], iteration_bounds = array<i64: 1>, scalar_prefetch = 0 : i64, scratch_operands = 0 : i64, tpu.core_type = #tpu.core_type<tc>, window_params = [{transform_indices = @transform_0, window_bounds = array<i64: 16, 11>}, {pipeline_mode = #tpu.pipeline_mode<synchronous>, transform_indices = @transform_1, window_bounds = array<i64: 11, 256>}, {pipeline_mode = #tpu.pipeline_mode<synchronous>, transform_indices = @transform_2, window_bounds = array<i64: 1, 256>}, {pipeline_mode = #tpu.pipeline_mode<synchronous>, transform_indices = @transform_3, window_bounds = array<i64: 256, 128>}, {pipeline_mode = #tpu.pipeline_mode<synchronous>, transform_indices = @transform_4, window_bounds = array<i64: 1, 128>}, {pipeline_mode = #tpu.pipeline_mode<synchronous>, transform_indices = @transform_5, window_bounds = array<i64: 128, 256>}, {pipeline_mode = #tpu.pipeline_mode<synchronous>, transform_indices = @transform_6, window_bounds = array<i64: 1, 256>}, {pipeline_mode = #tpu.pipeline_mode<synchronous>, transform_indices = @transform_7, window_bounds = array<i64: 256, 128>}, {pipeline_mode = #tpu.pipeline_mode<synchronous>, transform_indices = @transform_8, window_bounds = array<i64: 1, 128>}, {pipeline_mode = #tpu.pipeline_mode<synchronous>, transform_indices = @transform_9, window_bounds = array<i64: 128, 64>}, {pipeline_mode = #tpu.pipeline_mode<synchronous>, transform_indices = @transform_10, window_bounds = array<i64: 1, 64>}, {pipeline_mode = #tpu.pipeline_mode<synchronous>, transform_indices = @transform_11, window_bounds = array<i64: 64, 128>}, {pipeline_mode = #tpu.pipeline_mode<synchronous>, transform_indices = @transform_12, window_bounds = array<i64: 1, 128>}, {transform_indices = @transform_13, window_bounds = array<i64: 16, 2>}]} {
    %c0 = arith.constant 0 : index
    %c0_0 = arith.constant 0 : index
    %0 = vector.load %arg1[%c0, %c0_0] : memref<16x11xf32, #tpu.memory_space<vmem>>, vector<16x11xf32>
    %1 = arith.truncf %0 : vector<16x11xf32> to vector<16x11xbf16>
    %c0_1 = arith.constant 0 : index
    %c0_2 = arith.constant 0 : index
    %2 = vector.load %arg2[%c0_1, %c0_2] : memref<11x256xbf16, #tpu.memory_space<vmem>>, vector<11x256xbf16>
    %cst = arith.constant dense<0.000000e+00> : vector<16x256xf32>
    %3 = tpu.matmul %1, %2, %cst {dimension_numbers = #tpu.dot_dimension_numbers<[1], [0], [0], [1], [0, 0, 1, 1], [], []>} : vector<16x11xbf16>, vector<11x256xbf16>, vector<16x256xf32> -> vector<16x256xf32>
    %c0_3 = arith.constant 0 : index
    %c0_4 = arith.constant 0 : index
    %4 = vector.load %arg3[%c0_3, %c0_4] : memref<1x256xf32, #tpu.memory_space<vmem>>, vector<1x256xf32>
    %5 = vector.broadcast %4 : vector<1x256xf32> to vector<16x256xf32>
    %6 = arith.addf %3, %5 : vector<16x256xf32>
    %cst_5 = arith.constant 0.000000e+00 : f32
    %7 = vector.broadcast %cst_5 : f32 to vector<16x256xf32>
    %8 = arith.maximumf %6, %7 : vector<16x256xf32>
    %9 = arith.truncf %8 : vector<16x256xf32> to vector<16x256xbf16>
    %c0_6 = arith.constant 0 : index
    %c0_7 = arith.constant 0 : index
    %10 = vector.load %arg4[%c0_6, %c0_7] : memref<256x128xbf16, #tpu.memory_space<vmem>>, vector<256x128xbf16>
    %cst_8 = arith.constant dense<0.000000e+00> : vector<16x128xf32>
    %11 = tpu.matmul %9, %10, %cst_8 {dimension_numbers = #tpu.dot_dimension_numbers<[1], [0], [0], [1], [0, 0, 1, 1], [], []>} : vector<16x256xbf16>, vector<256x128xbf16>, vector<16x128xf32> -> vector<16x128xf32>
    %c0_9 = arith.constant 0 : index
    %c0_10 = arith.constant 0 : index
    %12 = vector.load %arg5[%c0_9, %c0_10] : memref<1x128xf32, #tpu.memory_space<vmem>>, vector<1x128xf32>
    %13 = vector.broadcast %12 : vector<1x128xf32> to vector<16x128xf32>
    %14 = arith.addf %11, %13 : vector<16x128xf32>
    %15 = arith.truncf %14 : vector<16x128xf32> to vector<16x128xbf16>
    %c0_11 = arith.constant 0 : index
    %c0_12 = arith.constant 0 : index
    %16 = vector.load %arg6[%c0_11, %c0_12] : memref<128x256xbf16, #tpu.memory_space<vmem>>, vector<128x256xbf16>
    %cst_13 = arith.constant dense<0.000000e+00> : vector<16x256xf32>
    %17 = tpu.matmul %15, %16, %cst_13 {dimension_numbers = #tpu.dot_dimension_numbers<[1], [0], [0], [1], [0, 0, 1, 1], [], []>} : vector<16x128xbf16>, vector<128x256xbf16>, vector<16x256xf32> -> vector<16x256xf32>
    %c0_14 = arith.constant 0 : index
    %c0_15 = arith.constant 0 : index
    %18 = vector.load %arg7[%c0_14, %c0_15] : memref<1x256xf32, #tpu.memory_space<vmem>>, vector<1x256xf32>
    %19 = vector.broadcast %18 : vector<1x256xf32> to vector<16x256xf32>
    %20 = arith.addf %17, %19 : vector<16x256xf32>
    %cst_16 = arith.constant 0.000000e+00 : f32
    %21 = vector.broadcast %cst_16 : f32 to vector<16x256xf32>
    %22 = arith.maximumf %20, %21 : vector<16x256xf32>
    %23 = arith.truncf %22 : vector<16x256xf32> to vector<16x256xbf16>
    %c0_17 = arith.constant 0 : index
    %c0_18 = arith.constant 0 : index
    %24 = vector.load %arg8[%c0_17, %c0_18] : memref<256x128xbf16, #tpu.memory_space<vmem>>, vector<256x128xbf16>
    %cst_19 = arith.constant dense<0.000000e+00> : vector<16x128xf32>
    %25 = tpu.matmul %23, %24, %cst_19 {dimension_numbers = #tpu.dot_dimension_numbers<[1], [0], [0], [1], [0, 0, 1, 1], [], []>} : vector<16x256xbf16>, vector<256x128xbf16>, vector<16x128xf32> -> vector<16x128xf32>
    %c0_20 = arith.constant 0 : index
    %c0_21 = arith.constant 0 : index
    %26 = vector.load %arg9[%c0_20, %c0_21] : memref<1x128xf32, #tpu.memory_space<vmem>>, vector<1x128xf32>
    %27 = vector.broadcast %26 : vector<1x128xf32> to vector<16x128xf32>
    %28 = arith.addf %25, %27 : vector<16x128xf32>
    %cst_22 = arith.constant 0.000000e+00 : f32
    %29 = vector.broadcast %cst_22 : f32 to vector<16x128xf32>
    %30 = arith.maximumf %28, %29 : vector<16x128xf32>
    %31 = arith.truncf %30 : vector<16x128xf32> to vector<16x128xbf16>
    %c0_23 = arith.constant 0 : index
    %c0_24 = arith.constant 0 : index
    %32 = vector.load %arg10[%c0_23, %c0_24] : memref<128x64xbf16, #tpu.memory_space<vmem>>, vector<128x64xbf16>
    %cst_25 = arith.constant dense<0.000000e+00> : vector<16x64xf32>
    %33 = tpu.matmul %31, %32, %cst_25 {dimension_numbers = #tpu.dot_dimension_numbers<[1], [0], [0], [1], [0, 0, 1, 1], [], []>} : vector<16x128xbf16>, vector<128x64xbf16>, vector<16x64xf32> -> vector<16x64xf32>
    %c0_26 = arith.constant 0 : index
    %c0_27 = arith.constant 0 : index
    %34 = vector.load %arg11[%c0_26, %c0_27] : memref<1x64xf32, #tpu.memory_space<vmem>>, vector<1x64xf32>
    %35 = vector.broadcast %34 : vector<1x64xf32> to vector<16x64xf32>
    %36 = arith.addf %33, %35 : vector<16x64xf32>
    %cst_28 = arith.constant 0.000000e+00 : f32
    %37 = vector.broadcast %cst_28 : f32 to vector<16x64xf32>
    %38 = arith.maximumf %36, %37 : vector<16x64xf32>
    %39 = arith.truncf %38 : vector<16x64xf32> to vector<16x64xbf16>
    %c0_29 = arith.constant 0 : index
    %c0_30 = arith.constant 0 : index
    %40 = vector.load %arg12[%c0_29, %c0_30] : memref<64x128xbf16, #tpu.memory_space<vmem>>, vector<64x128xbf16>
    %cst_31 = arith.constant dense<0.000000e+00> : vector<16x128xf32>
    %41 = tpu.matmul %39, %40, %cst_31 {dimension_numbers = #tpu.dot_dimension_numbers<[1], [0], [0], [1], [0, 0, 1, 1], [], []>} : vector<16x64xbf16>, vector<64x128xbf16>, vector<16x128xf32> -> vector<16x128xf32>
    %c0_32 = arith.constant 0 : index
    %c0_33 = arith.constant 0 : index
    %42 = vector.load %arg13[%c0_32, %c0_33] : memref<1x128xf32, #tpu.memory_space<vmem>>, vector<1x128xf32>
    %43 = vector.broadcast %42 : vector<1x128xf32> to vector<16x128xf32>
    %44 = arith.addf %41, %43 : vector<16x128xf32>
    %45 = vector.extract_strided_slice %44 {offsets = [0, 0], sizes = [16, 2], strides = [1, 1]} : vector<16x128xf32> to vector<16x2xf32>
    %c0_34 = arith.constant 0 : index
    %c0_35 = arith.constant 0 : index
    %46 = vector.load %arg14[%c0_34, %c0_35] : memref<16x2xf32, #tpu.memory_space<vmem>>, vector<16x2xf32>
    tpu.vector_store %arg14[%c0_34, %c0_35], %45 {strides = array<i32>} : memref<16x2xf32, #tpu.memory_space<vmem>>, vector<16x2xf32>,
    return
  }
  func.func @transform_0(%arg0: i32) -> (i32, i32) {
    %c0_i32 = arith.constant 0 : i32
    %c0_i32_0 = arith.constant 0 : i32
    return %arg0, %c0_i32 : i32, i32
  }
  func.func @transform_1(%arg0: i32) -> (i32, i32) {
    %c0_i32 = arith.constant 0 : i32
    %c0_i32_0 = arith.constant 0 : i32
    %c0_i32_1 = arith.constant 0 : i32
    return %c0_i32, %c0_i32_0 : i32, i32
  }
  func.func @transform_2(%arg0: i32) -> (i32, i32) {
    %c0_i32 = arith.constant 0 : i32
    %c0_i32_0 = arith.constant 0 : i32
    %c0_i32_1 = arith.constant 0 : i32
    return %c0_i32, %c0_i32_0 : i32, i32
  }
  func.func @transform_3(%arg0: i32) -> (i32, i32) {
    %c0_i32 = arith.constant 0 : i32
    %c0_i32_0 = arith.constant 0 : i32
    %c0_i32_1 = arith.constant 0 : i32
    return %c0_i32, %c0_i32_0 : i32, i32
  }
  func.func @transform_4(%arg0: i32) -> (i32, i32) {
    %c0_i32 = arith.constant 0 : i32
    %c0_i32_0 = arith.constant 0 : i32
    %c0_i32_1 = arith.constant 0 : i32
    return %c0_i32, %c0_i32_0 : i32, i32
  }
  func.func @transform_5(%arg0: i32) -> (i32, i32) {
    %c0_i32 = arith.constant 0 : i32
    %c0_i32_0 = arith.constant 0 : i32
    %c0_i32_1 = arith.constant 0 : i32
    return %c0_i32, %c0_i32_0 : i32, i32
  }
  func.func @transform_6(%arg0: i32) -> (i32, i32) {
    %c0_i32 = arith.constant 0 : i32
    %c0_i32_0 = arith.constant 0 : i32
    %c0_i32_1 = arith.constant 0 : i32
    return %c0_i32, %c0_i32_0 : i32, i32
  }
  func.func @transform_7(%arg0: i32) -> (i32, i32) {
    %c0_i32 = arith.constant 0 : i32
    %c0_i32_0 = arith.constant 0 : i32
    %c0_i32_1 = arith.constant 0 : i32
    return %c0_i32, %c0_i32_0 : i32, i32
  }
  func.func @transform_8(%arg0: i32) -> (i32, i32) {
    %c0_i32 = arith.constant 0 : i32
    %c0_i32_0 = arith.constant 0 : i32
    %c0_i32_1 = arith.constant 0 : i32
    return %c0_i32, %c0_i32_0 : i32, i32
  }
  func.func @transform_9(%arg0: i32) -> (i32, i32) {
    %c0_i32 = arith.constant 0 : i32
    %c0_i32_0 = arith.constant 0 : i32
    %c0_i32_1 = arith.constant 0 : i32
    return %c0_i32, %c0_i32_0 : i32, i32
  }
  func.func @transform_10(%arg0: i32) -> (i32, i32) {
    %c0_i32 = arith.constant 0 : i32
    %c0_i32_0 = arith.constant 0 : i32
    %c0_i32_1 = arith.constant 0 : i32
    return %c0_i32, %c0_i32_0 : i32, i32
  }
  func.func @transform_11(%arg0: i32) -> (i32, i32) {
    %c0_i32 = arith.constant 0 : i32
    %c0_i32_0 = arith.constant 0 : i32
    %c0_i32_1 = arith.constant 0 : i32
    return %c0_i32, %c0_i32_0 : i32, i32
  }
  func.func @transform_12(%arg0: i32) -> (i32, i32) {
    %c0_i32 = arith.constant 0 : i32
    %c0_i32_0 = arith.constant 0 : i32
    %c0_i32_1 = arith.constant 0 : i32
    return %c0_i32, %c0_i32_0 : i32, i32
  }
  func.func @transform_13(%arg0: i32) -> (i32, i32) {
    %c0_i32 = arith.constant 0 : i32
    %c0_i32_0 = arith.constant 0 : i32
    return %arg0, %c0_i32 : i32, i32
  }
}

</mosaic_0001>

<bundles_post_ra>
// kernel: tpu_custom_call.1
= control target key start
LH: loop header
LB: loop body
LE: loop exit
PB: predicated region body
PF: predicated region fallthrough
CT: control target
= control target key end

     0   :  { %18 = vsyncpa [#allocation3], 0  ;;  %s1333_s0 = inlined_call_operand.vmem [shape: f32[16,11], index: 0, kind: input, shape index: {}]   ;;  %s1334_s1 = inlined_call_operand.vmem [shape: bf16[11,256], index: 1, kind: input, shape index: {}]   ;;  %s1335_s2 = inlined_call_operand.vmem [shape: f32[1,256], index: 2, kind: input, shape index: {}]   ;;  %s1336_s3 = inlined_call_operand.hbm [shape: bf16[256,128], index: 3, kind: input, shape index: {}]   ;;  %s1337_s4 = inlined_call_operand.vmem [shape: f32[1,128], index: 4, kind: input, shape index: {}]   ;;  %s1338_s5 = inlined_call_operand.hbm [shape: bf16[128,256], index: 5, kind: input, shape index: {}]   ;;  %s1339_s6 = inlined_call_operand.vmem [shape: f32[1,256], index: 6, kind: input, shape index: {}]   ;;  %s1340_s7 = inlined_call_operand.hbm [shape: bf16[256,128], index: 7, kind: input, shape index: {}]   ;;  %s1341_s8 = inlined_call_operand.vmem [shape: f32[1,128], index: 8, kind: input, shape index: {}]   ;;  %s1342_s9 = inlined_call_operand.vmem [shape: bf16[128,64], index: 9, kind: input, shape index: {}]   ;;  %s1343_s10 = inlined_call_operand.vmem [shape: f32[1,64], index: 10, kind: input, shape index: {}]   ;;  %s1344_s11 = inlined_call_operand.vmem [shape: bf16[64,128], index: 11, kind: input, shape index: {}]   ;;  %s1345_s12 = inlined_call_operand.vmem [shape: f32[1,128], index: 12, kind: input, shape index: {}]   ;;  %s1346_s13 = inlined_call_operand.vmem [shape: f32[16,2], index: 13, kind: output, shape index: {}]  }
   0x1   :  { %19 = vsyncpa [#allocation5], 0  ;;  %s45_s27 = sshll.u32 %s1338_s5, 4  ;;  %s1168_s28 = smov [#allocation4]   ;;  %s46_s27 = int_to_ptr.hbm [resolvable:$true] %s45_s27 }
   0x2   :  { %s47_s29 = sshll.u32 %s1168_s28, 4  ;;  %s30_s15 = sshll.u32 %s1336_s3, 4  ;;  %s48_s29 = int_to_ptr.vmem [resolvable:$true] %s47_s29  ;;  %s31_s15 = int_to_ptr.hbm [resolvable:$true] %s30_s15 }
   0x3   :  { %s1169_s16 = smov 128   ;;  %s1170_s17 = smov 8  }
   0x4   :  { %53 = dma.hbm_to_vmem [thread:$0]  %s46_s27, 2048, %s48_s29, [#allocation5], %s1169_s16, %s1169_s16, %s1170_s17  }
   0x5   :  { %s1171_s18 = smov [#allocation2]   ;;  %s1172_s20 = smov 64  }
   0x6   :  { %s32_s19 = sshll.u32 %s1171_s18, 4  ;;  %s1173_s21 = smov 4   ;;  %s33_s19 = int_to_ptr.vmem [resolvable:$true] %s32_s19 }
   0x7   :  { %38 = dma.hbm_to_vmem [thread:$0]  %s31_s15, 2048, %s33_s19, [#allocation3], %s1172_s20, %s1172_s20, %s1173_s21  }
   0x8   :  { %s60_s23 = sshll.u32 %s1340_s7, 4  ;;  %s1174_s24 = smov [#allocation6]   ;;  %s61_s23 = int_to_ptr.hbm [resolvable:$true] %s60_s23 }
   0x9   :  { %s62_s25 = sshll.u32 %s1174_s24, 4  ;;  %s63_s25 = int_to_ptr.vmem [resolvable:$true] %s62_s25 }
   0xa   :  { %68 = dma.hbm_to_vmem [thread:$0]  %s61_s23, 2048, %s63_s25, [#allocation5], %s1172_s20, %s1172_s20, %s1173_s21  }
   0xb   :  { %1164 = dma.done.wait [#allocation3], 2048  }
   0xc   :  { %1165 = vsyncadd [#allocation3], 4294965248 }
   0xd   :  { %1166 = dma.done.wait [#allocation5], 4096  }
   0xe   :  { %1167 = vsyncadd [#allocation5], 4294963200  ;;  %vm115_vm0 = vcmask 1044480   ;;  %vm116_vm1 = vcmask 1045504   ;;  %v1175_v0 = vmov 65535   ;;  %v92_v8 = vld [vmem:[%s1333_s0] sm:$0xff] }
   0xf   :  { %v117_v1 = vsel %vm115_vm0, 4294967295, %v1175_v0  ;;  %v769_v3 = vld [vmem:[%s1334_s1] sm:$0xf]  ;;  %v1019_v4 = vld [vmem:[%s1334_s1 + $0x4] sm:$0x30]  ;;  %v1027_v11 = vld [vmem:[#allocation2 + $0x38] sm:$0xff] }
  0x10   :  { %v118_v2 = vsel %vm116_vm1, %v117_v1, 0  ;;  %v1018_v5 = vld [vmem:[%s1334_s1 + $0x4] sm:$0xf]  ;;  %v770_v6 = vor.u32 %v1019_v4, %v769_v3  ;;  %v771_v7 = vld [vmem:[%s1334_s1 + $0x8] sm:$0x30]  ;;  %v1035_v12 = vld [vmem:[#allocation2 + $0x78] sm:$0xff]  ;;  %291 = vmatpush.bf16.msra.mxu2 %v1027_v11 }
  0x11   :  { %v93_v9 = vld [vmem:[%s1333_s0 + $0x8] sm:$0xff]  ;;  %v774_v10 = vor.u32 %v1018_v5, %v771_v7  ;;  %305 = vmatpush.bf16.msra.mxu3 %v1035_v12  ;;  %v1026_v16 = vld [vmem:[#allocation2 + $0x30] sm:$0xff]  ;;  %vm111_vm2 = vcmask 89088   ;;  %v1024_v20 = vld [vmem:[#allocation2 + $0x20] sm:$0xff]  ;;  %vm740_vm3 = vcmask 523264   ;;  %vm758_vm4 = vcmask 15360  }
  0x12   :  { %v120_v13 = vand.u32 %v770_v6, %v118_v2  ;;  %v94_v15 = vpack.c.bf16 %v93_v9, %v92_v8  ;;  %v1034_v17 = vld [vmem:[#allocation2 + $0x70] sm:$0xff]  ;;  %v1025_v18 = vld [vmem:[#allocation2 + $0x28] sm:$0xff]  ;;  %v1032_v21 = vld [vmem:[#allocation2 + $0x60] sm:$0xff] }
  0x13   :  { %v123_v14 = vand.u32 %v774_v10, %v118_v2  ;;  %v1033_v19 = vld [vmem:[#allocation2 + $0x68] sm:$0xff]  ;;  %v1023_v22 = vld [vmem:[#allocation2 + $0x18] sm:$0xff]  ;;  %v1022_v24 = vld [vmem:[#allocation2 + $0x10] sm:$0xff] }
  0x14   :  { %132 = vmatpush.bf16.msra.mxu0 %v120_v13  ;;  %292 = vmatpush.bf16.msra.mxu2 %v1026_v16  ;;  %v1031_v23 = vld [vmem:[#allocation2 + $0x58] sm:$0xff]  ;;  %v1030_v25 = vld [vmem:[#allocation2 + $0x50] sm:$0xff]  ;;  %v1021_v26 = vld [vmem:[#allocation2 + $0x8] sm:$0xff] }
  0x15   :  { %146 = vmatpush.bf16.msra.mxu1 %v123_v14  ;;  %306 = vmatpush.bf16.msra.mxu3 %v1034_v17  ;;  %v1029_v27 = vld [vmem:[#allocation2 + $0x48] sm:$0xff]  ;;  %v1020_v28 = vld [vmem:[#allocation2] sm:$0xff]  ;;  %v899_v30 = vld [vmem:[#allocation4 + $0x70] sm:$0xf] }
  0x16   :  { %v1028_v29 = vld [vmem:[#allocation2 + $0x40] sm:$0xff]  ;;  %v1051_v31 = vld [vmem:[#allocation4 + $0x74] sm:$0xf0]  ;;  %v1050_v32 = vld [vmem:[#allocation4 + $0x74] sm:$0xf] }
  0x17   :  { %775 = vmatmul.msk.bf16.vlgmr.msra.gmra.mxu0 %vm111_vm2, %v94_v15  ;;  %v900_v33 = vor.u32 %v1051_v31, %v899_v30  ;;  %v901_v34 = vld [vmem:[#allocation4 + $0x78] sm:$0xf0]  ;;  %v891_v35 = vld [vmem:[#allocation4 + $0x60] sm:$0xf]  ;;  %v1049_v36 = vld [vmem:[#allocation4 + $0x64] sm:$0xf0] }
  0x18   :  { %776 = vmatmul.msk.bf16.vlgmr.msra.gmra.mxu1 %vm111_vm2, %v94_v15  ;;  %293 = vmatpush.bf16.msra.mxu2 %v1025_v18  ;;  %v904_v37 = vor.u32 %v1050_v32, %v901_v34  ;;  %v1048_v38 = vld [vmem:[#allocation4 + $0x64] sm:$0xf]  ;;  %v893_v39 = vld [vmem:[#allocation4 + $0x68] sm:$0xf0]  ;;  %v892_v40 = vor.u32 %v1049_v36, %v891_v35  ;;  %v883_v42 = vld [vmem:[#allocation4 + $0x50] sm:$0xf] }
  0x19   :  { %307 = vmatpush.bf16.msra.mxu3 %v1033_v19  ;;  %422 = vmatpush.bf16.msrb.mxu0 %v900_v33  ;;  %v896_v41 = vor.u32 %v1048_v38, %v893_v39  ;;  %v1047_v43 = vld [vmem:[#allocation4 + $0x54] sm:$0xf0]  ;;  %v1046_v44 = vld [vmem:[#allocation4 + $0x54] sm:$0xf]  ;;  %v885_v45 = vld [vmem:[#allocation4 + $0x58] sm:$0xf0] }
  0x1a   :  { %436 = vmatpush.bf16.msrb.mxu1 %v904_v37  ;;  %v884_v46 = vor.u32 %v1047_v43, %v883_v42  ;;  %v888_v47 = vor.u32 %v1046_v44, %v885_v45  ;;  %v875_v48 = vld [vmem:[#allocation4 + $0x40] sm:$0xf]  ;;  %v1045_v49 = vld [vmem:[#allocation4 + $0x44] sm:$0xf0]  ;;  %v1044_v50 = vld [vmem:[#allocation4 + $0x44] sm:$0xf] }
  0x1b   :  { %v877_v51 = vld [vmem:[#allocation4 + $0x48] sm:$0xf0]  ;;  %v876_v52 = vor.u32 %v1045_v49, %v875_v48  ;;  %v97_v54 = vld [vmem:[%s1335_s2] sm:$0x3]  ;;  %v867_v7 = vld [vmem:[#allocation4 + $0x30] sm:$0xf] }
  0x1c   :  { %294 = vmatpush.bf16.msra.mxu2 %v1024_v20  ;;  %v880_v53 = vor.u32 %v1044_v50, %v877_v51  ;;  %v99_v57 = vperm.slane %v97_v54, 0  ;;  %v100_v58 = vperm.slane %v97_v54, 1  ;;  %v1043_v8 = vld [vmem:[#allocation4 + $0x34] sm:$0xf0]  ;;  %v1042_v9 = vld [vmem:[#allocation4 + $0x34] sm:$0xf] }
  0x1d   :  { %308 = vmatpush.bf16.msra.mxu3 %v1032_v21  ;;  %423 = vmatpush.bf16.msrb.mxu0 %v892_v40  ;;  %v868_v10 = vor.u32 %v1043_v8, %v867_v7  ;;  %v869_v11 = vld [vmem:[#allocation4 + $0x38] sm:$0xf0]  ;;  %v859_v13 = vld [vmem:[#allocation4 + $0x20] sm:$0xf]  ;;  %v1041_v14 = vld [vmem:[#allocation4 + $0x24] sm:$0xf0] }
  0x1e   :  { %437 = vmatpush.bf16.msrb.mxu1 %v896_v41  ;;  %v872_v12 = vor.u32 %v1042_v9, %v869_v11  ;;  %v1040_v15 = vld [vmem:[#allocation4 + $0x24] sm:$0xf]  ;;  %v860_v16 = vor.u32 %v1041_v14, %v859_v13  ;;  %v861_v17 = vld [vmem:[#allocation4 + $0x28] sm:$0xf0]  ;;  %v851_v19 = vld [vmem:[#allocation4 + $0x10] sm:$0xf] }
  0x1f   :  { %v864_v18 = vor.u32 %v1040_v15, %v861_v17  ;;  %v1039_v20 = vld [vmem:[#allocation4 + $0x14] sm:$0xf0]  ;;  %v1038_v21 = vld [vmem:[#allocation4 + $0x14] sm:$0xf]  ;;  %v1057_v35 = vld [vmem:[#allocation6 + $0x28] sm:$0xff] }
  0x20   :  { %295 = vmatpush.bf16.msra.mxu2 %v1023_v22  ;;  %v852_v22 = vor.u32 %v1039_v20, %v851_v19  ;;  %v1059_v31 = vld [vmem:[#allocation6 + $0x38] sm:$0xff]  ;;  %v1058_v33 = vld [vmem:[#allocation6 + $0x30] sm:$0xff]  ;;  %v1065_v36 = vld [vmem:[#allocation6 + $0x68] sm:$0xff] }
  0x21   :  { %309 = vmatpush.bf16.msra.mxu3 %v1031_v23  ;;  %424 = vmatpush.bf16.msrb.mxu0 %v884_v46  ;;  %v853_v23 = vld [vmem:[#allocation4 + $0x18] sm:$0xf0]  ;;  %v1066_v34 = vld [vmem:[#allocation6 + $0x70] sm:$0xff]  ;;  %v1056_v37 = vld [vmem:[#allocation6 + $0x20] sm:$0xff] }
  0x22   :  { %438 = vmatpush.bf16.msrb.mxu1 %v888_v47  ;;  %v1067_v32 = vld [vmem:[#allocation6 + $0x78] sm:$0xff]  ;;  %v1064_v38 = vld [vmem:[#allocation6 + $0x60] sm:$0xff]  ;;  %v1054_v51 = vld [vmem:[#allocation6 + $0x10] sm:$0xff] }
  0x23   :  { %v1088_v41 = vld [vmem:[%s1337_s4] ss:$0 sm:$0xff]  ;;  %v1055_v49 = vld [vmem:[#allocation6 + $0x18] sm:$0xff]  ;;  %v1061_v54 = vld [vmem:[#allocation6 + $0x48] sm:$0xff] }
  0x24   :  { %296 = vmatpush.bf16.msra.mxu2 %v1022_v24  ;;  %v856_v24 = vor.u32 %v1038_v21, %v853_v23  ;;  %v1063_v50 = vld [vmem:[#allocation6 + $0x58] sm:$0xff]  ;;  %v1070_v15 = vld [vmem:[%s1342_s9 + $0x10] sm:$0xff]  ;;  %v1068_v17 = vld [vmem:[%s1342_s9] sm:$0xff] }
  0x25   :  { %310 = vmatpush.bf16.msra.mxu3 %v1030_v25  ;;  %425 = vmatpush.bf16.msrb.mxu0 %v876_v52  ;;  %v843_v25 = vld [vmem:[#allocation4] sm:$0xf]  ;;  %v1062_v52 = vld [vmem:[#allocation6 + $0x50] sm:$0xff]  ;;  %v1071_v14 = vld [vmem:[%s1342_s9 + $0x18] sm:$0xff] }
  0x26   :  { %439 = vmatpush.bf16.msrb.mxu1 %v880_v53  ;;  %v1053_v53 = vld [vmem:[#allocation6 + $0x8] sm:$0xff]  ;;  %v1089_v21 = vld [vmem:[%s1341_s8] ss:$0 sm:$0xff] }
  0x28   :  { %297 = vmatpush.bf16.msra.mxu2 %v1021_v26  ;;  %v1037_v26 = vld [vmem:[#allocation4 + $0x4] sm:$0xf0] }
  0x29   :  { %311 = vmatpush.bf16.msra.mxu3 %v1029_v27  ;;  %426 = vmatpush.bf16.msrb.mxu0 %v868_v10  ;;  %v1036_v27 = vld [vmem:[#allocation4 + $0x4] sm:$0xf] }
  0x2a   :  { %440 = vmatpush.bf16.msrb.mxu1 %v872_v12 }
  0x2c   :  { %298 = vmatpush.bf16.msra.mxu2 %v1020_v28  ;;  %v844_v28 = vor.u32 %v1037_v26, %v843_v25 }
  0x2d   :  { %312 = vmatpush.bf16.msra.mxu3 %v1028_v29  ;;  %427 = vmatpush.bf16.msrb.mxu0 %v860_v16  ;;  %v845_v29 = vld [vmem:[#allocation4 + $0x8] sm:$0xf0] }
  0x2e   :  { %441 = vmatpush.bf16.msrb.mxu1 %v864_v18  ;;  %v848_v30 = vor.u32 %v1036_v27, %v845_v29  ;;  %v1069_v16 = vld [vmem:[%s1342_s9 + $0x8] sm:$0xff]  ;;  %v1079_v18 = vld [vmem:[%s1344_s11 + $0x18] sm:$0xff] }
  0x30   :  { %588 = vmatpush.bf16.msrb.mxu2 %v1059_v31  ;;  %v1078_v31 = vld [vmem:[%s1344_s11 + $0x10] sm:$0xff] }
  0x31   :  { %428 = vmatpush.bf16.msrb.mxu0 %v852_v22  ;;  %602 = vmatpush.bf16.msrb.mxu3 %v1067_v32  ;;  %v1077_v32 = vld [vmem:[%s1344_s11 + $0x8] sm:$0xff] }
  0x32   :  { %442 = vmatpush.bf16.msrb.mxu1 %v856_v24 }
  0x34   :  { %589 = vmatpush.bf16.msrb.mxu2 %v1058_v33  ;;  %v1076_v33 = vld [vmem:[%s1344_s11] sm:$0xff] }
  0x35   :  { %429 = vmatpush.bf16.msrb.mxu0 %v844_v28  ;;  %603 = vmatpush.bf16.msrb.mxu3 %v1066_v34 }
  0x36   :  { %443 = vmatpush.bf16.msrb.mxu1 %v848_v30 }
  0x38   :  { %590 = vmatpush.bf16.msrb.mxu2 %v1057_v35  ;;  %v1090_v35 = vld [vmem:[%s1343_s10] ss:$0 sm:$0xff] }
  0x39   :  { %604 = vmatpush.bf16.msrb.mxu3 %v1065_v36 }
  0x3a   :  { %748 = vmatpush.bf16.msra.mxu1 %v1079_v18 }
  0x3c   :  { %591 = vmatpush.bf16.msrb.mxu2 %v1056_v37 }
  0x3d   :  { %605 = vmatpush.bf16.msrb.mxu3 %v1064_v38 }
  0x3e   :  { %749 = vmatpush.bf16.msra.mxu1 %v1078_v31 }
  0x40   :  { %592 = vmatpush.bf16.msrb.mxu2 %v1055_v49 }
  0x41   :  { %606 = vmatpush.bf16.msrb.mxu3 %v1063_v50 }
  0x42   :  { %750 = vmatpush.bf16.msra.mxu1 %v1077_v32 }
  0x44   :  { %593 = vmatpush.bf16.msrb.mxu2 %v1054_v51 }
  0x45   :  { %607 = vmatpush.bf16.msrb.mxu3 %v1062_v52 }
  0x46   :  { %751 = vmatpush.bf16.msra.mxu1 %v1076_v33 }
  0x48   :  { %594 = vmatpush.bf16.msrb.mxu2 %v1053_v53 }
  0x49   :  { %608 = vmatpush.bf16.msrb.mxu3 %v1061_v54 }
  0x94   :  { %v134_v55 = vpop.f32.mrf.mxu0 }
  0x95   :  { %v148_v56 = vpop.f32.mrf.mxu1  ;;  %v135_v59 = vadd.f32 %v134_v55, %v99_v57  ;;  %v1052_v55 = vld [vmem:[#allocation6] sm:$0xff] }
  0x96   :  { %v149_v60 = vadd.f32 %v148_v56, %v100_v58  ;;  %v1060_v56 = vld [vmem:[#allocation6 + $0x40] sm:$0xff]  ;;  %595 = vmatpush.bf16.msrb.mxu2 %v1052_v55 }
  0x97   :  { %v153_v1 = vmax.f32 %v135_v59, 0.0  ;;  %609 = vmatpush.bf16.msrb.mxu3 %v1060_v56  ;;  %v1073_v59 = vld [vmem:[%s1342_s9 + $0x28] sm:$0xff] }
  0x98   :  { %v154_v3 = vmax.f32 %v149_v60, 0.0  ;;  %v1072_v60 = vld [vmem:[%s1342_s9 + $0x20] sm:$0xff] }
  0x9c   :  { %v136_v61 = vpop.f32.mrf.mxu0 }
  0x9d   :  { %v137_v62 = vadd.f32 %v136_v61, %v99_v57  ;;  %v150_v63 = vpop.f32.mrf.mxu1  ;;  %v1075_v57 = vld [vmem:[%s1342_s9 + $0x38] sm:$0xff]  ;;  %v336_v61 = vld [vmem:[%s1339_s6] sm:$0x3] }
  0x9e   :  { %v151_v0 = vadd.f32 %v150_v63, %v100_v58  ;;  %687 = vmatpush.bf16.msra.mxu0 %v1075_v57  ;;  %v1074_v58 = vld [vmem:[%s1342_s9 + $0x30] sm:$0xff] }
  0x9f   :  { %v155_v2 = vmax.f32 %v137_v62, 0.0 }
  0xa0   :  { %v156_v4 = vmax.f32 %v151_v0, 0.0  ;;  %v338_v0 = vperm.slane %v336_v61, 0 }
  0xa1   :  { %v157_v5 = vpack.c.bf16 %v155_v2, %v153_v1  ;;  %v339_v1 = vperm.slane %v336_v61, 1 }
  0xa2   :  { %v158_v6 = vpack.c.bf16 %v156_v4, %v154_v3  ;;  %688 = vmatpush.bf16.msra.mxu0 %v1074_v58 }
  0xa3   :  { %299 = vmatmul.bf16.vlgmr.msra.gmra.mxu2 %v157_v5 }
  0xa4   :  { %313 = vmatmul.bf16.vlgmr.msra.gmra.mxu3 %v158_v6 }
  0xa6   :  { %689 = vmatpush.bf16.msra.mxu0 %v1073_v59 }
  0xaa   :  { %690 = vmatpush.bf16.msra.mxu0 %v1072_v60 }
  0xae   :  { %691 = vmatpush.bf16.msra.mxu0 %v1071_v14 }
  0xb2   :  { %692 = vmatpush.bf16.msra.mxu0 %v1070_v15 }
  0xb6   :  { %693 = vmatpush.bf16.msra.mxu0 %v1069_v16 }
  0xba   :  { %694 = vmatpush.bf16.msra.mxu0 %v1068_v17 }
 0x126   :  { %v300_v39 = vpop.f32.mrf.mxu2 }
 0x127   :  { %v314_v40 = vpop.f32.mrf.mxu3  ;;  %v301_v42 = vadd.f32 %v1088_v41, %v300_v39 }
 0x129   :  { %v315_v46 = vadd.f32 %v314_v40, %v301_v42  ;;  %v1091_v42 = vld [vmem:[%s1345_s12] ss:$0 sm:$0xff] }
 0x12e   :  { %v302_v43 = vpop.f32.mrf.mxu2 }
 0x12f   :  { %v303_v44 = vadd.f32 %v1088_v41, %v302_v43  ;;  %v316_v45 = vpop.f32.mrf.mxu3 }
 0x131   :  { %v317_v47 = vadd.f32 %v316_v45, %v303_v44 }
 0x133   :  { %v319_v48 = vpack.c.bf16 %v317_v47, %v315_v46 }
 0x135   :  { %430 = vmatmul.bf16.vlgmr.msrb.gmra.mxu0 %v319_v48  ;;  %444 = vmatmul.bf16.vlgmr.msrb.gmra.mxu1 %v319_v48 }
 0x1b2   :  { %v431_v62 = vpop.f32.mrf.mxu0  ;;  %v445_v63 = vpop.f32.mrf.mxu1 }
 0x1b3   :  { %v432_v2 = vadd.f32 %v431_v62, %v338_v0  ;;  %v446_v3 = vadd.f32 %v445_v63, %v339_v1 }
 0x1b5   :  { %v450_v8 = vmax.f32 %v432_v2, 0.0  ;;  %v451_v9 = vmax.f32 %v446_v3, 0.0 }
 0x1ba   :  { %v433_v4 = vpop.f32.mrf.mxu0  ;;  %v447_v5 = vpop.f32.mrf.mxu1 }
 0x1bb   :  { %v434_v6 = vadd.f32 %v433_v4, %v338_v0  ;;  %v448_v7 = vadd.f32 %v447_v5, %v339_v1 }
 0x1bd   :  { %v452_v10 = vmax.f32 %v434_v6, 0.0  ;;  %v453_v11 = vmax.f32 %v448_v7, 0.0 }
 0x1bf   :  { %v454_v12 = vpack.c.bf16 %v452_v10, %v450_v8  ;;  %v455_v13 = vpack.c.bf16 %v453_v11, %v451_v9 }
 0x1c1   :  { %596 = vmatmul.bf16.vlgmr.msrb.gmra.mxu2 %v454_v12  ;;  %610 = vmatmul.bf16.vlgmr.msrb.gmra.mxu3 %v455_v13 }
 0x244   :  { %v597_v19 = vpop.f32.mrf.mxu2  ;;  %v611_v20 = vpop.f32.mrf.mxu3 }
 0x245   :  { %v598_v22 = vadd.f32 %v1089_v21, %v597_v19 }
 0x247   :  { %v612_v24 = vadd.f32 %v611_v20, %v598_v22 }
 0x249   :  { %v616_v28 = vmax.f32 %v612_v24, 0.0 }
 0x24c   :  { %v599_v23 = vpop.f32.mrf.mxu2  ;;  %v613_v26 = vpop.f32.mrf.mxu3 }
 0x24d   :  { %v600_v25 = vadd.f32 %v1089_v21, %v599_v23 }
 0x24f   :  { %v614_v27 = vadd.f32 %v613_v26, %v600_v25 }
 0x251   :  { %v617_v29 = vmax.f32 %v614_v27, 0.0 }
 0x253   :  { %v618_v30 = vpack.c.bf16 %v617_v29, %v616_v28 }
 0x255   :  { %695 = vmatmul.bf16.vlgmr.msra.gmra.mxu0 %v618_v30 }
 0x2d2   :  { %v696_v34 = vpop.f32.mrf.mxu0 }
 0x2d3   :  { %v697_v36 = vadd.f32 %v1090_v35, %v696_v34 }
 0x2d5   :  { %v701_v39 = vmax.f32 %v697_v36, 0.0 }
 0x2da   :  { %v698_v37 = vpop.f32.mrf.mxu0 }
 0x2db   :  { %v699_v38 = vadd.f32 %v1090_v35, %v698_v37 }
 0x2dd   :  { %v702_v40 = vmax.f32 %v699_v38, 0.0 }
 0x2df   :  { %v703_v41 = vpack.c.bf16 %v702_v40, %v701_v39 }
 0x2e1   :  { %1017 = vmatmul.msk.bf16.vlgmr.msra.gmra.mxu1 %vm740_vm3, %v703_v41 }
 0x35e   :  { %v753_v43 = vpop.f32.mrf.mxu1 }
 0x35f   :  { %v754_v44 = vadd.f32 %v1091_v42, %v753_v43 }
 0x361   :  { %759 = vst.msk [vmem:[%s1346_s13] sm:$0xff] %vm758_vm4, %v754_v44 }
 0x366   :  { %v755_v45 = vpop.f32.mrf.mxu1 }
 0x367   :  { %v756_v46 = vadd.f32 %v1091_v42, %v755_v45 }
 0x369   :  { %760 = vst.msk [vmem:[%s1346_s13 + $0x8] sm:$0xff] %vm758_vm4, %v756_v46 }
 0x36a   :  { %765 = vsyncpa [#allocation3], 1 }
 0x36b   :  { %766 = vsyncpa [#allocation5], 1 }

</bundles_post_ra>
